<compile_context>
chip_gen: v7x
topology: tpu7x:2x2x1
jax: 0.10.0
libtpu: 0.0.40
codegen_flags: <defaults>
</compile_context>

<pallas_src>
import functools
import math

import jax
import jax.numpy as jnp
from jax.experimental import pallas as pl
from jax.experimental.pallas import tpu as pltpu


def _round_up(x: int, m: int) -> int:
    return (x + m - 1) // m * m


def _stft_fused_kernel(frames_ref, basis_ref, out_ref, *, n_freq_pad: int, magnitude: bool):
    """One MXU matmul per frame tile: [TILE_M, n_fft] @ [n_fft, 2*n_freq_pad]."""
    f = frames_ref[...]
    z = jnp.dot(f, basis_ref[...], preferred_element_type=jnp.float32)
    if magnitude:
        re = z[:, :n_freq_pad]          # static slices at 128-aligned boundary
        im = z[:, n_freq_pad:]
        out_ref[...] = jnp.sqrt(re * re + im * im)
    else:
        out_ref[...] = z                # [TILE_M, 2*n_freq_pad] = (re | im)


class STFTPallas:
    """JAX/Pallas port of the PyTorch STFT module's forward pass."""

    def __init__(self, n_fft, hop_size, win_size=None, center=True, magnitude=True,
                 win_type='hann', window=None, normalized=False, pad_mode='reflect',
                 compute_dtype=jnp.bfloat16, tile_m=256):
        self.center = center
        self.magnitude = magnitude
        self.n_fft = n_fft
        self.hop_size = hop_size
        self.padding = 0 if center else (n_fft + 1 - hop_size) // 2
        self.clip = hop_size % 2 == 1
        self.pad_mode = pad_mode
        # torch.stft is called with normalized=False in the module's forward; kept for parity.
        self.normalized = normalized
        self.compute_dtype = compute_dtype
        self.tile_m = tile_m

        if win_size is None:
            win_size = n_fft
        if window is not None:
            window = jnp.asarray(window, jnp.float32)
            win_size = window.shape[-1]
        elif win_type is None:
            window = jnp.ones(win_size, jnp.float32)
        elif win_type == 'hann':
            # torch.hann_window(win_size) (periodic): 0.5 - 0.5*cos(2*pi*n/win_size)
            n = jnp.arange(win_size, dtype=jnp.float32)
            window = 0.5 - 0.5 * jnp.cos(2.0 * math.pi * n / win_size)
        else:
            raise NotImplementedError(f'win_type={win_type}')
        self.win_size = win_size
        assert n_fft >= win_size, f'n_fft({n_fft}) must be >= win_size({win_size})'

        # torch.stft semantics: window zero-padded to n_fft, centered.
        left = (n_fft - win_size) // 2
        win_full = jnp.zeros(n_fft, jnp.float32).at[left:left + win_size].set(window)
        self._win_full = win_full  # kept in f32 for reference checks

        n_freq = n_fft // 2 + 1
        n_freq_pad = _round_up(n_freq, 128)
        self.n_freq = n_freq
        self.n_freq_pad = n_freq_pad

        nn = jnp.arange(n_fft, dtype=jnp.float32)[:, None]
        kk = jnp.arange(n_freq, dtype=jnp.float32)[None, :]
        ang = 2.0 * math.pi * nn * kk / n_fft
        cos_b = win_full[:, None] * jnp.cos(ang)        # [n_fft, n_freq]
        sin_b = -win_full[:, None] * jnp.sin(ang)       # [n_fft, n_freq]
        pad_cols = n_freq_pad - n_freq
        cos_b = jnp.pad(cos_b, ((0, 0), (0, pad_cols)))
        sin_b = jnp.pad(sin_b, ((0, 0), (0, pad_cols)))
        # Fused basis: one resident [n_fft, 2*n_freq_pad] matrix -> single matmul/tile.
        self.basis = jnp.concatenate([cos_b, sin_b], axis=1).astype(compute_dtype)

    def __call__(self, x):
        if x.ndim == 3:
            x = x[:, 0, :]          # squeeze(1)
        x = x.astype(jnp.float32)

        if self.padding > 0:        # only when center=False
            x = jnp.pad(x, ((0, 0), (self.padding, self.padding)), mode=self.pad_mode)
        if self.center:             # torch.stft center padding (n_fft//2, reflect)
            pad = self.n_fft // 2
            x = jnp.pad(x, ((0, 0), (pad, pad)), mode=self.pad_mode)

        B, T = x.shape
        n_fft, hop = self.n_fft, self.hop_size
        n_freq, n_freq_pad = self.n_freq, self.n_freq_pad
        n_frames = 1 + (T - n_fft) // hop

        # Framing (hop-strided gather) is glue; matmuls + magnitude run in the kernel.
        idx = jnp.arange(n_frames)[:, None] * hop + jnp.arange(n_fft)[None, :]
        frames = x[:, idx].reshape(B * n_frames, n_fft)          # [M, n_fft] f32
        M = B * n_frames

        # Tile over M: pad rows so the grid divides exactly (zero rows, sliced off below).
        tile_m = min(self.tile_m, _round_up(M, 8))
        tile_m = _round_up(tile_m, 8)
        M_pad = _round_up(M, tile_m)
        if M_pad != M:
            frames = jnp.pad(frames, ((0, M_pad - M), (0, 0)))
        frames = frames.astype(self.compute_dtype)
        grid_m = M_pad // tile_m

        out_cols = n_freq_pad if self.magnitude else 2 * n_freq_pad
        kernel = functools.partial(_stft_fused_kernel,
                                   n_freq_pad=n_freq_pad,
                                   magnitude=self.magnitude)

        in_itemsize = jnp.dtype(self.compute_dtype).itemsize
        cost = pl.CostEstimate(
            flops=2 * M_pad * n_fft * 2 * n_freq_pad,
            transcendentals=(M_pad * n_freq_pad) if self.magnitude else 0,
            bytes_accessed=(M_pad * n_fft * in_itemsize
                            + n_fft * 2 * n_freq_pad * in_itemsize
                            + M_pad * out_cols * 4),
        )

        out = pl.pallas_call(
            kernel,
            grid=(grid_m,),
            in_specs=[
                pl.BlockSpec((tile_m, n_fft), lambda i: (i, 0)),          # frames tile (pipelined)
                pl.BlockSpec((n_fft, 2 * n_freq_pad), lambda i: (0, 0)),  # fused basis (resident)
            ],
            out_specs=pl.BlockSpec((tile_m, out_cols), lambda i: (i, 0)),
            out_shape=jax.ShapeDtypeStruct((M_pad, out_cols), jnp.float32),
            compiler_params=pltpu.CompilerParams(
                dimension_semantics=("parallel",)),
            cost_estimate=cost,
        )(frames, self.basis)

        if self.magnitude:
            spec = out[:M, :n_freq]                                        # drop row/lane padding
            spec = spec.reshape(B, n_frames, n_freq).transpose(0, 2, 1)    # [B, n_freq, n_frames]
        else:
            re = out[:M, :n_freq]
            im = out[:M, n_freq_pad:n_freq_pad + n_freq]
            spec = jnp.stack([re, im], axis=-1)                            # [M, n_freq, 2]
            spec = spec.reshape(B, n_frames, n_freq, 2).transpose(0, 2, 1, 3)  # [B, n_freq, n_frames, 2]

        if self.clip:
            spec = spec[:, :, :-1]
        return spec


def _reference_frames(x, stft: STFTPallas):
    if x.ndim == 3:
        x = x[:, 0, :]
    x = x.astype(jnp.float32)
    if stft.padding > 0:
        x = jnp.pad(x, ((0, 0), (stft.padding, stft.padding)), mode=stft.pad_mode)
    if stft.center:
        pad = stft.n_fft // 2
        x = jnp.pad(x, ((0, 0), (pad, pad)), mode=stft.pad_mode)
    B, T = x.shape
    n_fft, hop = stft.n_fft, stft.hop_size
    n_frames = 1 + (T - n_fft) // hop
    idx = jnp.arange(n_frames)[:, None] * hop + jnp.arange(n_fft)[None, :]
    return x[:, idx]                                            # [B, n_frames, n_fft]


def _reference_stft_mag(x, stft: STFTPallas):
    """Pure-JAX reference (jnp.fft.rfft) for correctness checking (magnitude)."""
    frames = _reference_frames(x, stft)
    spec = jnp.fft.rfft(frames * stft._win_full[None, None, :], n=stft.n_fft, axis=-1)
    mag = jnp.abs(spec).transpose(0, 2, 1)                      # [B, n_freq, n_frames]
    if stft.clip:
        mag = mag[:, :, :-1]
    return mag


def _reference_stft_complex(x, stft: STFTPallas):
    """Pure-JAX reference for the magnitude=False path ([B, n_freq, n_frames, 2])."""
    frames = _reference_frames(x, stft)
    spec = jnp.fft.rfft(frames * stft._win_full[None, None, :], n=stft.n_fft, axis=-1)
    out = jnp.stack([jnp.real(spec), jnp.imag(spec)], axis=-1)  # [B, n_frames, n_freq, 2]
    out = out.transpose(0, 2, 1, 3)                             # [B, n_freq, n_frames, 2]
    if stft.clip:
        out = out[:, :, :-1]
    return out


if __name__ == "__main__":
    # Small, module-consistent shapes: B=2 waveforms of length 64, n_fft=16, hop=4.
    B, T_wav = 2, 64
    n_fft, hop = 16, 4

    key = jax.random.PRNGKey(0)
    x = jax.random.normal(key, (B, 1, T_wav), dtype=jnp.float32)  # [B, 1, T_wav] input variant

    expected_shape = (B, n_fft // 2 + 1, T_wav // hop + 1)

    # --- magnitude path, bf16 MXU inputs (default; loosened tolerance) ---
    stft_bf16 = STFTPallas(n_fft=n_fft, hop_size=hop, center=True, magnitude=True,
                           win_type='hann', compute_dtype=jnp.bfloat16)
    spec = jax.block_until_ready(stft_bf16(x))
    assert spec.shape == expected_shape, (spec.shape, expected_shape)
    assert spec.dtype == jnp.float32
    ref = _reference_stft_mag(x, stft_bf16)
    assert jnp.allclose(spec, ref, atol=5e-2, rtol=5e-2), float(jnp.max(jnp.abs(spec - ref)))

    # --- magnitude path, f32 inputs (tight tolerance) ---
    stft_f32 = STFTPallas(n_fft=n_fft, hop_size=hop, center=True, magnitude=True,
                          win_type='hann', compute_dtype=jnp.float32)
    spec32 = jax.block_until_ready(stft_f32(x))
    assert spec32.shape == expected_shape
    ref32 = _reference_stft_mag(x, stft_f32)
    assert jnp.allclose(spec32, ref32, atol=1e-3, rtol=1e-3), float(jnp.max(jnp.abs(spec32 - ref32)))

    # --- complex path (magnitude=False), f32 inputs ---
    stft_c = STFTPallas(n_fft=n_fft, hop_size=hop, center=True, magnitude=False,
                        win_type='hann', compute_dtype=jnp.float32)
    spec_c = jax.block_until_ready(stft_c(x))
    assert spec_c.shape == expected_shape + (2,), spec_c.shape
    ref_c = _reference_stft_complex(x, stft_c)
    assert jnp.allclose(spec_c, ref_c, atol=1e-3, rtol=1e-3), float(jnp.max(jnp.abs(spec_c - ref_c)))

    print("KERNEL_OK")
</pallas_src>

<mosaic_0001>
module attributes {stable_mosaic.version = 11 : i64} {
  func.func @_stft_fused_kernel(%arg0: i32, %arg1: memref<40x16xbf16, #tpu.memory_space<vmem>>, %arg2: memref<16x256xbf16, #tpu.memory_space<vmem>>, %arg3: memref<40x128xf32, #tpu.memory_space<vmem>>) attributes {dimension_semantics = [#tpu.dimension_semantics<parallel>], iteration_bounds = array<i64: 1>, scalar_prefetch = 0 : i64, scratch_operands = 0 : i64, tpu.core_type = #tpu.core_type<tc>, window_params = [{transform_indices = @transform_0, window_bounds = array<i64: 40, 16>}, {pipeline_mode = #tpu.pipeline_mode<synchronous>, transform_indices = @transform_1, window_bounds = array<i64: 16, 256>}, {transform_indices = @transform_2, window_bounds = array<i64: 40, 128>}]} {
    %c0 = arith.constant 0 : index
    %c0_0 = arith.constant 0 : index
    %0 = vector.load %arg1[%c0, %c0_0] : memref<40x16xbf16, #tpu.memory_space<vmem>>, vector<40x16xbf16>
    %c0_1 = arith.constant 0 : index
    %c0_2 = arith.constant 0 : index
    %1 = vector.load %arg2[%c0_1, %c0_2] : memref<16x256xbf16, #tpu.memory_space<vmem>>, vector<16x256xbf16>
    %cst = arith.constant dense<0.000000e+00> : vector<40x256xf32>
    %2 = tpu.matmul %0, %1, %cst {dimension_numbers = #tpu.dot_dimension_numbers<[1], [0], [0], [1], [0, 0, 1, 1], [], []>} : vector<40x16xbf16>, vector<16x256xbf16>, vector<40x256xf32> -> vector<40x256xf32>
    %3 = vector.extract_strided_slice %2 {offsets = [0, 0], sizes = [40, 128], strides = [1, 1]} : vector<40x256xf32> to vector<40x128xf32>
    %4 = vector.extract_strided_slice %2 {offsets = [0, 128], sizes = [40, 128], strides = [1, 1]} : vector<40x256xf32> to vector<40x128xf32>
    %5 = arith.mulf %3, %3 : vector<40x128xf32>
    %6 = arith.mulf %4, %4 : vector<40x128xf32>
    %7 = arith.addf %5, %6 : vector<40x128xf32>
    %8 = math.sqrt %7 : vector<40x128xf32>
    %c0_3 = arith.constant 0 : index
    %c0_4 = arith.constant 0 : index
    %9 = vector.load %arg3[%c0_3, %c0_4] : memref<40x128xf32, #tpu.memory_space<vmem>>, vector<40x128xf32>
    tpu.vector_store %arg3[%c0_3, %c0_4], %8 {strides = array<i32>} : memref<40x128xf32, #tpu.memory_space<vmem>>, vector<40x128xf32>,
    return
  }
  func.func @transform_0(%arg0: i32) -> (i32, i32) {
    %c0_i32 = arith.constant 0 : i32
    %c0_i32_0 = arith.constant 0 : i32
    return %arg0, %c0_i32 : i32, i32
  }
  func.func @transform_1(%arg0: i32) -> (i32, i32) {
    %c0_i32 = arith.constant 0 : i32
    %c0_i32_0 = arith.constant 0 : i32
    %c0_i32_1 = arith.constant 0 : i32
    return %c0_i32, %c0_i32_0 : i32, i32
  }
  func.func @transform_2(%arg0: i32) -> (i32, i32) {
    %c0_i32 = arith.constant 0 : i32
    %c0_i32_0 = arith.constant 0 : i32
    return %arg0, %c0_i32 : i32, i32
  }
}

</mosaic_0001>

<bundles_post_ra>
// kernel: tpu_custom_call.1
= control target key start
LH: loop header
LB: loop body
LE: loop exit
PB: predicated region body
PF: predicated region fallthrough
CT: control target
= control target key end

     0   :  { %v239_v2 = vmov 0   ;;  %vm43_vm0 = vcmask 130048   ;;  %s285_s0 = inlined_call_operand.vmem [shape: bf16[40,16], index: 0, kind: input, shape index: {}]   ;;  %s286_s1 = inlined_call_operand.vmem [shape: bf16[16,256], index: 1, kind: input, shape index: {}]   ;;  %s287_s2 = inlined_call_operand.hbm [shape: f32[40,128], index: 2, kind: output, shape index: {}]  }
   0x1   :  { %v199_v0 = vld [vmem:[%s286_s1 + $0x4] ss:$8 sps:$4 sm:$0xff]   ;;  %v201_v1 = vld [vmem:[%s286_s1] ss:$8 sps:$4 sm:$0xff]   ;;  %85 = vmatprep.mubr.bf16.mxu0 %v239_v2  ;;  %95 = vmatprep.mubr.bf16.mxu1 %v239_v2 }
   0x2   :  { %53 = vmatprep.subr.bf16.mxu0 %v199_v0  ;;  %193 = vmatprep.subr.bf16.mxu1 %v199_v0  ;;  %v202_v3 = vld [vmem:[%s285_s0] sm:$0xff]   ;;  %v203_v4 = vld [vmem:[%s285_s0 + $0x8] sm:$0xff]  }
   0x3   :  { %54 = vmatpush1.bf16.msra.mxu0 %v201_v1  ;;  %194 = vmatpush1.bf16.msra.mxu1 %v201_v1 }
   0x4   :  { %7 = vsyncpa [#allocation3], 0  ;;  %v204_v5 = vld [vmem:[%s285_s0 + $0x10] ss:$0 sps:$4 sm:$0xff]   ;;  %s240_s0 = smov [#allocation2]  }
   0x5   :  { %s174_s18 = sshll.u32 %s240_s0, 4  ;;  %s175_s18 = int_to_ptr.vmem [resolvable:$true] %s174_s18 }
   0x6   :  { %190 = vmatmul.mubr.msk.bf16.vlgmr.msra.gmra.mrb[0].mxu0 %vm43_vm0, %v202_v3  ;;  %191 = vmatmul.mubr.msk.bf16.vlgmr.msra.gmra.mrb[0].mxu1 %vm43_vm0, %v203_v4  ;;  %s215_s19 = scalar_lea.vmem %s175_s18, 640  ;;  %p220_p1 = scmp.lt.s32.totalorder %s175_s18, %s175_s18 }
   0x7   :  { %105 = vmatprep.mubr.bf16.mxu1 %v239_v2  ;;  %p216_p0 = scmp.ne.s32.totalorder %s175_s18, %s215_s19  ;;  %p221_p2 = scmp.lt.s32.totalorder %s215_s19, %s215_s19 }
   0x9   :  { %p222_p3 = por %p221_p2, %p220_p1 }
   0xb   :  { %p223_p4 = pnand %p222_p3, %p216_p0 }
   0xe   :  { %192 = vmatmul.mubr.msk.bf16.gmra.mrb[4].mxu1 %vm43_vm0, %v204_v5 }
  0xd9   :  { %v87_v6 = vpop.f32.mrb[0].mxu0  ;;  %v97_v7 = vpop.f32.mrb[0].mxu1 }
  0xda   :  { %v114_v8 = vmul.f32 %v87_v6, %v87_v6  ;;  %v116_v9 = vmul.f32 %v97_v7, %v97_v7  ;;  %v89_v10 = vpop.f32.mrb[1].mxu0  ;;  %v99_v11 = vpop.f32.mrb[1].mxu1 }
  0xdb   :  { %v119_v12 = vmul.f32 %v89_v10, %v89_v10  ;;  %v121_v13 = vmul.f32 %v99_v11, %v99_v11  ;;  %v91_v14 = vpop.f32.mrb[2].mxu0  ;;  %v101_v15 = vpop.f32.mrb[2].mxu1 }
  0xdc   :  { %v115_v16 = vmul.f32 %v91_v14, %v91_v14  ;;  %v117_v17 = vmul.f32 %v101_v15, %v101_v15  ;;  %v93_v18 = vpop.f32.mrb[3].mxu0  ;;  %v103_v19 = vpop.f32.mrb[3].mxu1 }
  0xdd   :  { %v124_v20 = vadd.f32 %v119_v12, %v114_v8  ;;  %v126_v21 = vadd.f32 %v121_v13, %v116_v9  ;;  %v120_v22 = vmul.f32 %v93_v18, %v93_v18  ;;  %v122_v23 = vmul.f32 %v103_v19, %v103_v19 }
  0xdf   :  { %205 = vrsqrt.f32 %v124_v20  ;;  %v125_v24 = vadd.f32 %v120_v22, %v115_v16  ;;  %v127_v25 = vadd.f32 %v122_v23, %v117_v17  ;;  %vm131_vm1 = vcmp.eq.f32.partialorder %v124_v20, inf }
  0xe0   :  { %207 = vrsqrt.f32 %v126_v21  ;;  %v134_v36 = vand.u32 2147483648, %v124_v20  ;;  %vm133_vm2 = vcmp.eq.f32.partialorder %v124_v20, 0.0  ;;  %vm145_vm3 = vcmp.eq.f32.partialorder %v126_v21, inf }
  0xe1   :  { %v107_v26 = vpop.f32.mrb[4].mxu1  ;;  %209 = vrsqrt.f32 %v125_v24  ;;  %v148_v39 = vand.u32 2147483648, %v126_v21  ;;  %vm147_vm4 = vcmp.eq.f32.partialorder %v126_v21, 0.0  ;;  %vm138_vm5 = vcmp.eq.f32.partialorder %v125_v24, inf }
  0xe2   :  { %v109_v27 = vpop.f32.mrb[5].mxu1  ;;  %v118_v28 = vmul.f32 %v107_v26, %v107_v26  ;;  %211 = vrsqrt.f32 %v127_v25  ;;  %v141_v46 = vand.u32 2147483648, %v125_v24  ;;  %vm140_vm6 = vcmp.eq.f32.partialorder %v125_v24, 0.0 }
  0xe3   :  { %v111_v29 = vpop.f32.mrb[6].mxu1  ;;  %v123_v31 = vmul.f32 %v109_v27, %v109_v27  ;;  %vm152_vm7 = vcmp.eq.f32.partialorder %v127_v25, inf  ;;  %v155_v49 = vand.u32 2147483648, %v127_v25  ;;  %vm154_vm8 = vcmp.eq.f32.partialorder %v127_v25, 0.0 }
  0xe4   :  { %v112_v30 = vpop.f32.mrb[7].mxu1 }
  0xe5   :  { %v128_v32 = vadd.f32 %v123_v31, %v118_v28 }
  0xe7   :  { %213 = vrsqrt.f32 %v128_v32  ;;  %vm159_vm9 = vcmp.eq.f32.partialorder %v128_v32, inf  ;;  %v162_v55 = vand.u32 2147483648, %v128_v32  ;;  %vm161_vm10 = vcmp.eq.f32.partialorder %v128_v32, 0.0 }
  0xe9   :  { %v206_v33 = vpop.eup %205 }
  0xea   :  { %v208_v34 = vpop.eup %207  ;;  %v130_v35 = vmul.f32 %v206_v33, %v124_v20 }
  0xeb   :  { %v144_v37 = vmul.f32 %v208_v34, %v126_v21  ;;  %v210_v40 = vpop.eup %209 }
  0xec   :  { %v132_v38 = vsel %vm131_vm1, %v124_v20, %v130_v35  ;;  %v212_v43 = vpop.eup %211  ;;  %v137_v44 = vmul.f32 %v210_v40, %v125_v24 }
  0xed   :  { %v146_v41 = vsel %vm145_vm3, %v126_v21, %v144_v37  ;;  %v135_v42 = vsel %vm133_vm2, %v134_v36, %v132_v38  ;;  %v151_v47 = vmul.f32 %v212_v43, %v127_v25 }
  0xee   :  { %v149_v45 = vsel %vm147_vm4, %v148_v39, %v146_v41  ;;  %164 = vst [vmem:[#allocation2] sm:$0xff] %v135_v42  ;;  %v139_v48 = vsel %vm138_vm5, %v125_v24, %v137_v44 }
  0xef   :  { %166 = vst [vmem:[#allocation2 + $0x10] sm:$0xff] %v149_v45  ;;  %v153_v50 = vsel %vm152_vm7, %v127_v25, %v151_v47  ;;  %v142_v51 = vsel %vm140_vm6, %v141_v46, %v139_v48 }
  0xf0   :  { %v156_v52 = vsel %vm154_vm8, %v155_v49, %v153_v50  ;;  %165 = vst [vmem:[#allocation2 + $0x8] sm:$0xff] %v142_v51 }
  0xf1   :  { %v214_v53 = vpop.eup %213  ;;  %167 = vst [vmem:[#allocation2 + $0x18] sm:$0xff] %v156_v52 }
  0xf2   :  { %v158_v54 = vmul.f32 %v214_v53, %v128_v32 }
  0xf4   :  { %v160_v56 = vsel %vm159_vm9, %v128_v32, %v158_v54 }
  0xf5   :  { %v163_v57 = vsel %vm161_vm10, %v162_v55, %v160_v56 }
  0xf6   :  { %168 = vst [vmem:[#allocation2 + $0x20] sm:$0xff] %v163_v57 }
  0xf7   :  { %226 = shalt.err (!%p223_p4)
}
  0xf8   :  { %s227_s22 = scalar_lea.hbm %s287_s2, 640 }
  0xf9   :  { %p228_p5 = scmp.ne.s32.totalorder %s287_s2, %s227_s22  ;;  %p231_p6 = scmp.lt.u32.totalorder %s227_s22, %s287_s2 }
  0xfb   :  { %p233_p7 = pnand %p231_p6, %p228_p5 }
  0xfd   :  { %236 = shalt.err (!%p233_p7)
}
  0xfe   :  { %s241_s27 = smov 128   ;;  %s242_s28 = smov 8  }
  0xff   :  { %180 = dma.vmem_to_hbm [thread:$0]  %s175_s18, 640, %s287_s2, [#allocation3], %s241_s27, %s241_s27, %s242_s28  }
 0x100   :  { %237 = dma.done.wait [#allocation3], 640  }
 0x101   :  { %238 = vsyncadd [#allocation3], 4294966656 }
 0x102   :  { %184 = vsyncpa [#allocation3], 1 }

</bundles_post_ra>
